<compile_context>
chip_gen: v7x
topology: tpu7x:2x2x1
jax: 0.10.0
libtpu: 0.0.40
codegen_flags: <defaults>
</compile_context>

<pallas_src>
import jax
import jax.numpy as jnp
from jax.experimental import pallas as pl
from jax.experimental.pallas import tpu as pltpu
import numpy as np

EPS = 0.003


def _round_up(x, m):
    return (x + m - 1) // m * m


def _critic_kernel(p_ref, s_ref, a_ref, o_ref):
    """Fused Critic forward on one lane-dense batch tile.

    p_ref : SMEM f32[3*S + A + 9]  packed params
            [ Ws (S,3 row-major) | bs (3) | Wa (A) | ba (1) | wf (4) | bf (1) ]
    s_ref : VMEM f32[S, Bt]   state tile  (batch on lanes)
    a_ref : VMEM f32[A, Bt]   action tile (batch on lanes)
    o_ref : VMEM f32[1, Bt]   output tile (lane dense)
    """
    S = s_ref.shape[0]
    A = a_ref.shape[0]
    o_ws = 0
    o_bs = 3 * S
    o_wa = o_bs + 3
    o_ba = o_wa + A
    o_wf = o_ba + 1
    o_bf = o_wf + 4

    x = s_ref[...]                                   # (S, Bt)
    y = a_ref[...]                                   # (A, Bt)
    xs = [x[k:k + 1, :] for k in range(S)]           # hoisted row views
    ys = [y[k:k + 1, :] for k in range(A)]

    # --- state branch: 3 hidden units, relu, immediately weighted by wf[j] ---
    out = None
    for j in range(3):
        h = xs[0] * p_ref[o_ws + j]
        for k in range(1, S):
            h = h + xs[k] * p_ref[o_ws + k * 3 + j]
        h = jnp.maximum(h + p_ref[o_bs + j], 0.0)    # relu
        term = h * p_ref[o_wf + j]
        out = term if out is None else out + term

    # --- action branch: 1 hidden unit, leaky_relu(0.01) ---
    a1 = ys[0] * p_ref[o_wa]
    for k in range(1, A):
        a1 = a1 + ys[k] * p_ref[o_wa + k]
    a1 = a1 + p_ref[o_ba]
    a1 = jnp.where(a1 > 0.0, a1, 0.01 * a1)

    # --- fc1 over the virtual concat + bias ---
    out = out + a1 * p_ref[o_wf + 3] + p_ref[o_bf]
    o_ref[...] = out.astype(o_ref.dtype)


def critic_forward(state, action, params, *, block_b=8192):
    """state: (B, state_dim), action: (B, action_dim) or (B,) -> (B, 1)."""
    if action.ndim == 1:
        action = action[:, None]
    ws, bs, wa, ba, wf, bf = params
    B, S = state.shape
    A = action.shape[1]

    # One flat f32 parameter vector -> SMEM, resident across all grid steps.
    p_flat = jnp.concatenate([
        ws.reshape(-1), bs.reshape(-1), wa.reshape(-1),
        ba.reshape(-1), wf.reshape(-1), bf.reshape(-1)]).astype(jnp.float32)

    # Lane-dense layout: put batch on the last (lane) axis and pad to the tile.
    bt = min(block_b, _round_up(B, 128))
    B_pad = _round_up(B, bt)
    state_t = jnp.asarray(state, jnp.float32).T       # (S, B)
    action_t = jnp.asarray(action, jnp.float32).T     # (A, B)
    if B_pad != B:
        pad = B_pad - B
        state_t = jnp.pad(state_t, ((0, 0), (0, pad)))
        action_t = jnp.pad(action_t, ((0, 0), (0, pad)))

    grid = (B_pad // bt,)
    out = pl.pallas_call(
        _critic_kernel,
        out_shape=jax.ShapeDtypeStruct((1, B_pad), jnp.float32),
        grid=grid,
        in_specs=[
            pl.BlockSpec(memory_space=pltpu.MemorySpace.SMEM),   # params
            pl.BlockSpec((S, bt), lambda i: (0, i)),             # state tile
            pl.BlockSpec((A, bt), lambda i: (0, i)),             # action tile
        ],
        out_specs=pl.BlockSpec((1, bt), lambda i: (0, i)),
        compiler_params=pltpu.CompilerParams(
            dimension_semantics=("parallel",)),
    )(p_flat, state_t, action_t)

    return out[0, :B][:, None]


def init_critic_params(key, state_dim, action_dim):
    """Deterministic init mirroring the PyTorch __init__ distributions."""
    ks = jax.random.split(key, 6)

    # fcs1: weight (3, state_dim), fanin_init with fanin=3 -> stored transposed (S, 3)
    v = 1.0 / np.sqrt(3.0)
    ws = jax.random.uniform(ks[0], (state_dim, 3), jnp.float32, -v, v)
    vb = 1.0 / np.sqrt(state_dim)                     # default nn.Linear bias init
    bs = jax.random.uniform(ks[1], (3,), jnp.float32, -vb, vb)

    # fca1: weight (1, action_dim), fanin_init with fanin=1 -> stored (A,)
    v = 1.0
    wa = jax.random.uniform(ks[2], (action_dim,), jnp.float32, -v, v)
    vb = 1.0 / np.sqrt(action_dim)
    ba = jax.random.uniform(ks[3], (1,), jnp.float32, -vb, vb)

    # fc1: weight (1, 4) uniform(-EPS, EPS) -> stored (4,)
    wf = jax.random.uniform(ks[4], (4,), jnp.float32, -EPS, EPS)
    vb = 1.0 / np.sqrt(4.0)
    bf = jax.random.uniform(ks[5], (1,), jnp.float32, -vb, vb)

    return ws, bs, wa, ba, wf, bf


def critic_reference(state, action, params):
    """Pure-JAX reference for correctness check (PyTorch semantics)."""
    ws, bs, wa, ba, wf, bf = params
    if action.ndim == 1:
        action = action[:, None]
    s1 = jnp.maximum(state @ ws + bs[None, :], 0.0)
    a1 = action @ wa[:, None] + ba[None, :]
    a1 = jnp.where(a1 > 0.0, a1, 0.01 * a1)
    x = jnp.concatenate([s1, a1], axis=1)
    return x @ wf[:, None] + bf[None, :]


if __name__ == "__main__":
    state_dim, action_dim, batch = 8, 4, 2

    key = jax.random.PRNGKey(0)
    k_p, k_s, k_a = jax.random.split(key, 3)

    params = init_critic_params(k_p, state_dim, action_dim)
    state = jax.random.normal(k_s, (batch, state_dim), jnp.float32)
    action = jax.random.normal(k_a, (batch, action_dim), jnp.float32)

    out = critic_forward(state, action, params)
    out = jax.block_until_ready(out)

    ref = critic_reference(state, action, params)
    assert out.shape == (batch, 1), out.shape
    np.testing.assert_allclose(np.asarray(out), np.asarray(ref),
                               rtol=1e-5, atol=1e-5)
    print("KERNEL_OK")
</pallas_src>

<mosaic_0001>
module attributes {stable_mosaic.version = 11 : i64} {
  func.func @_critic_kernel(%arg0: i32, %arg1: memref<37xf32, #tpu.memory_space<smem>>, %arg2: memref<8x128xf32, #tpu.memory_space<vmem>>, %arg3: memref<4x128xf32, #tpu.memory_space<vmem>>, %arg4: memref<1x128xf32, #tpu.memory_space<vmem>>) attributes {dimension_semantics = [#tpu.dimension_semantics<parallel>], iteration_bounds = array<i64: 1>, scalar_prefetch = 0 : i64, scratch_operands = 0 : i64, tpu.core_type = #tpu.core_type<tc>, window_params = [{transform_indices = @transform_0, window_bounds = array<i64: 37>}, {transform_indices = @transform_1, window_bounds = array<i64: 8, 128>}, {transform_indices = @transform_2, window_bounds = array<i64: 4, 128>}, {transform_indices = @transform_3, window_bounds = array<i64: 1, 128>}]} {
    %c0 = arith.constant 0 : index
    %c0_0 = arith.constant 0 : index
    %0 = vector.load %arg2[%c0, %c0_0] : memref<8x128xf32, #tpu.memory_space<vmem>>, vector<8x128xf32>
    %c0_1 = arith.constant 0 : index
    %c0_2 = arith.constant 0 : index
    %1 = vector.load %arg3[%c0_1, %c0_2] : memref<4x128xf32, #tpu.memory_space<vmem>>, vector<4x128xf32>
    %2 = vector.extract_strided_slice %0 {offsets = [0, 0], sizes = [1, 128], strides = [1, 1]} : vector<8x128xf32> to vector<1x128xf32>
    %3 = vector.extract_strided_slice %0 {offsets = [1, 0], sizes = [1, 128], strides = [1, 1]} : vector<8x128xf32> to vector<1x128xf32>
    %4 = vector.extract_strided_slice %0 {offsets = [2, 0], sizes = [1, 128], strides = [1, 1]} : vector<8x128xf32> to vector<1x128xf32>
    %5 = vector.extract_strided_slice %0 {offsets = [3, 0], sizes = [1, 128], strides = [1, 1]} : vector<8x128xf32> to vector<1x128xf32>
    %6 = vector.extract_strided_slice %0 {offsets = [4, 0], sizes = [1, 128], strides = [1, 1]} : vector<8x128xf32> to vector<1x128xf32>
    %7 = vector.extract_strided_slice %0 {offsets = [5, 0], sizes = [1, 128], strides = [1, 1]} : vector<8x128xf32> to vector<1x128xf32>
    %8 = vector.extract_strided_slice %0 {offsets = [6, 0], sizes = [1, 128], strides = [1, 1]} : vector<8x128xf32> to vector<1x128xf32>
    %9 = vector.extract_strided_slice %0 {offsets = [7, 0], sizes = [1, 128], strides = [1, 1]} : vector<8x128xf32> to vector<1x128xf32>
    %10 = vector.extract_strided_slice %1 {offsets = [0, 0], sizes = [1, 128], strides = [1, 1]} : vector<4x128xf32> to vector<1x128xf32>
    %11 = vector.extract_strided_slice %1 {offsets = [1, 0], sizes = [1, 128], strides = [1, 1]} : vector<4x128xf32> to vector<1x128xf32>
    %12 = vector.extract_strided_slice %1 {offsets = [2, 0], sizes = [1, 128], strides = [1, 1]} : vector<4x128xf32> to vector<1x128xf32>
    %13 = vector.extract_strided_slice %1 {offsets = [3, 0], sizes = [1, 128], strides = [1, 1]} : vector<4x128xf32> to vector<1x128xf32>
    %c0_3 = arith.constant 0 : index
    %14 = memref.load %arg1[%c0_3] : memref<37xf32, #tpu.memory_space<smem>>
    %15 = vector.broadcast %14 : f32 to vector<1x128xf32>
    %16 = arith.mulf %2, %15 : vector<1x128xf32>
    %c3 = arith.constant 3 : index
    %17 = memref.load %arg1[%c3] : memref<37xf32, #tpu.memory_space<smem>>
    %18 = vector.broadcast %17 : f32 to vector<1x128xf32>
    %19 = arith.mulf %3, %18 : vector<1x128xf32>
    %20 = arith.addf %16, %19 : vector<1x128xf32>
    %c6 = arith.constant 6 : index
    %21 = memref.load %arg1[%c6] : memref<37xf32, #tpu.memory_space<smem>>
    %22 = vector.broadcast %21 : f32 to vector<1x128xf32>
    %23 = arith.mulf %4, %22 : vector<1x128xf32>
    %24 = arith.addf %20, %23 : vector<1x128xf32>
    %c9 = arith.constant 9 : index
    %25 = memref.load %arg1[%c9] : memref<37xf32, #tpu.memory_space<smem>>
    %26 = vector.broadcast %25 : f32 to vector<1x128xf32>
    %27 = arith.mulf %5, %26 : vector<1x128xf32>
    %28 = arith.addf %24, %27 : vector<1x128xf32>
    %c12 = arith.constant 12 : index
    %29 = memref.load %arg1[%c12] : memref<37xf32, #tpu.memory_space<smem>>
    %30 = vector.broadcast %29 : f32 to vector<1x128xf32>
    %31 = arith.mulf %6, %30 : vector<1x128xf32>
    %32 = arith.addf %28, %31 : vector<1x128xf32>
    %c15 = arith.constant 15 : index
    %33 = memref.load %arg1[%c15] : memref<37xf32, #tpu.memory_space<smem>>
    %34 = vector.broadcast %33 : f32 to vector<1x128xf32>
    %35 = arith.mulf %7, %34 : vector<1x128xf32>
    %36 = arith.addf %32, %35 : vector<1x128xf32>
    %c18 = arith.constant 18 : index
    %37 = memref.load %arg1[%c18] : memref<37xf32, #tpu.memory_space<smem>>
    %38 = vector.broadcast %37 : f32 to vector<1x128xf32>
    %39 = arith.mulf %8, %38 : vector<1x128xf32>
    %40 = arith.addf %36, %39 : vector<1x128xf32>
    %c21 = arith.constant 21 : index
    %41 = memref.load %arg1[%c21] : memref<37xf32, #tpu.memory_space<smem>>
    %42 = vector.broadcast %41 : f32 to vector<1x128xf32>
    %43 = arith.mulf %9, %42 : vector<1x128xf32>
    %44 = arith.addf %40, %43 : vector<1x128xf32>
    %c24 = arith.constant 24 : index
    %45 = memref.load %arg1[%c24] : memref<37xf32, #tpu.memory_space<smem>>
    %46 = vector.broadcast %45 : f32 to vector<1x128xf32>
    %47 = arith.addf %44, %46 : vector<1x128xf32>
    %cst = arith.constant 0.000000e+00 : f32
    %48 = vector.broadcast %cst : f32 to vector<1x128xf32>
    %49 = arith.maximumf %47, %48 : vector<1x128xf32>
    %c32 = arith.constant 32 : index
    %50 = memref.load %arg1[%c32] : memref<37xf32, #tpu.memory_space<smem>>
    %51 = vector.broadcast %50 : f32 to vector<1x128xf32>
    %52 = arith.mulf %49, %51 : vector<1x128xf32>
    %c1 = arith.constant 1 : index
    %53 = memref.load %arg1[%c1] : memref<37xf32, #tpu.memory_space<smem>>
    %54 = vector.broadcast %53 : f32 to vector<1x128xf32>
    %55 = arith.mulf %2, %54 : vector<1x128xf32>
    %c4 = arith.constant 4 : index
    %56 = memref.load %arg1[%c4] : memref<37xf32, #tpu.memory_space<smem>>
    %57 = vector.broadcast %56 : f32 to vector<1x128xf32>
    %58 = arith.mulf %3, %57 : vector<1x128xf32>
    %59 = arith.addf %55, %58 : vector<1x128xf32>
    %c7 = arith.constant 7 : index
    %60 = memref.load %arg1[%c7] : memref<37xf32, #tpu.memory_space<smem>>
    %61 = vector.broadcast %60 : f32 to vector<1x128xf32>
    %62 = arith.mulf %4, %61 : vector<1x128xf32>
    %63 = arith.addf %59, %62 : vector<1x128xf32>
    %c10 = arith.constant 10 : index
    %64 = memref.load %arg1[%c10] : memref<37xf32, #tpu.memory_space<smem>>
    %65 = vector.broadcast %64 : f32 to vector<1x128xf32>
    %66 = arith.mulf %5, %65 : vector<1x128xf32>
    %67 = arith.addf %63, %66 : vector<1x128xf32>
    %c13 = arith.constant 13 : index
    %68 = memref.load %arg1[%c13] : memref<37xf32, #tpu.memory_space<smem>>
    %69 = vector.broadcast %68 : f32 to vector<1x128xf32>
    %70 = arith.mulf %6, %69 : vector<1x128xf32>
    %71 = arith.addf %67, %70 : vector<1x128xf32>
    %c16 = arith.constant 16 : index
    %72 = memref.load %arg1[%c16] : memref<37xf32, #tpu.memory_space<smem>>
    %73 = vector.broadcast %72 : f32 to vector<1x128xf32>
    %74 = arith.mulf %7, %73 : vector<1x128xf32>
    %75 = arith.addf %71, %74 : vector<1x128xf32>
    %c19 = arith.constant 19 : index
    %76 = memref.load %arg1[%c19] : memref<37xf32, #tpu.memory_space<smem>>
    %77 = vector.broadcast %76 : f32 to vector<1x128xf32>
    %78 = arith.mulf %8, %77 : vector<1x128xf32>
    %79 = arith.addf %75, %78 : vector<1x128xf32>
    %c22 = arith.constant 22 : index
    %80 = memref.load %arg1[%c22] : memref<37xf32, #tpu.memory_space<smem>>
    %81 = vector.broadcast %80 : f32 to vector<1x128xf32>
    %82 = arith.mulf %9, %81 : vector<1x128xf32>
    %83 = arith.addf %79, %82 : vector<1x128xf32>
    %c25 = arith.constant 25 : index
    %84 = memref.load %arg1[%c25] : memref<37xf32, #tpu.memory_space<smem>>
    %85 = vector.broadcast %84 : f32 to vector<1x128xf32>
    %86 = arith.addf %83, %85 : vector<1x128xf32>
    %cst_4 = arith.constant 0.000000e+00 : f32
    %87 = vector.broadcast %cst_4 : f32 to vector<1x128xf32>
    %88 = arith.maximumf %86, %87 : vector<1x128xf32>
    %c33 = arith.constant 33 : index
    %89 = memref.load %arg1[%c33] : memref<37xf32, #tpu.memory_space<smem>>
    %90 = vector.broadcast %89 : f32 to vector<1x128xf32>
    %91 = arith.mulf %88, %90 : vector<1x128xf32>
    %92 = arith.addf %52, %91 : vector<1x128xf32>
    %c2 = arith.constant 2 : index
    %93 = memref.load %arg1[%c2] : memref<37xf32, #tpu.memory_space<smem>>
    %94 = vector.broadcast %93 : f32 to vector<1x128xf32>
    %95 = arith.mulf %2, %94 : vector<1x128xf32>
    %c5 = arith.constant 5 : index
    %96 = memref.load %arg1[%c5] : memref<37xf32, #tpu.memory_space<smem>>
    %97 = vector.broadcast %96 : f32 to vector<1x128xf32>
    %98 = arith.mulf %3, %97 : vector<1x128xf32>
    %99 = arith.addf %95, %98 : vector<1x128xf32>
    %c8 = arith.constant 8 : index
    %100 = memref.load %arg1[%c8] : memref<37xf32, #tpu.memory_space<smem>>
    %101 = vector.broadcast %100 : f32 to vector<1x128xf32>
    %102 = arith.mulf %4, %101 : vector<1x128xf32>
    %103 = arith.addf %99, %102 : vector<1x128xf32>
    %c11 = arith.constant 11 : index
    %104 = memref.load %arg1[%c11] : memref<37xf32, #tpu.memory_space<smem>>
    %105 = vector.broadcast %104 : f32 to vector<1x128xf32>
    %106 = arith.mulf %5, %105 : vector<1x128xf32>
    %107 = arith.addf %103, %106 : vector<1x128xf32>
    %c14 = arith.constant 14 : index
    %108 = memref.load %arg1[%c14] : memref<37xf32, #tpu.memory_space<smem>>
    %109 = vector.broadcast %108 : f32 to vector<1x128xf32>
    %110 = arith.mulf %6, %109 : vector<1x128xf32>
    %111 = arith.addf %107, %110 : vector<1x128xf32>
    %c17 = arith.constant 17 : index
    %112 = memref.load %arg1[%c17] : memref<37xf32, #tpu.memory_space<smem>>
    %113 = vector.broadcast %112 : f32 to vector<1x128xf32>
    %114 = arith.mulf %7, %113 : vector<1x128xf32>
    %115 = arith.addf %111, %114 : vector<1x128xf32>
    %c20 = arith.constant 20 : index
    %116 = memref.load %arg1[%c20] : memref<37xf32, #tpu.memory_space<smem>>
    %117 = vector.broadcast %116 : f32 to vector<1x128xf32>
    %118 = arith.mulf %8, %117 : vector<1x128xf32>
    %119 = arith.addf %115, %118 : vector<1x128xf32>
    %c23 = arith.constant 23 : index
    %120 = memref.load %arg1[%c23] : memref<37xf32, #tpu.memory_space<smem>>
    %121 = vector.broadcast %120 : f32 to vector<1x128xf32>
    %122 = arith.mulf %9, %121 : vector<1x128xf32>
    %123 = arith.addf %119, %122 : vector<1x128xf32>
    %c26 = arith.constant 26 : index
    %124 = memref.load %arg1[%c26] : memref<37xf32, #tpu.memory_space<smem>>
    %125 = vector.broadcast %124 : f32 to vector<1x128xf32>
    %126 = arith.addf %123, %125 : vector<1x128xf32>
    %cst_5 = arith.constant 0.000000e+00 : f32
    %127 = vector.broadcast %cst_5 : f32 to vector<1x128xf32>
    %128 = arith.maximumf %126, %127 : vector<1x128xf32>
    %c34 = arith.constant 34 : index
    %129 = memref.load %arg1[%c34] : memref<37xf32, #tpu.memory_space<smem>>
    %130 = vector.broadcast %129 : f32 to vector<1x128xf32>
    %131 = arith.mulf %128, %130 : vector<1x128xf32>
    %132 = arith.addf %92, %131 : vector<1x128xf32>
    %c27 = arith.constant 27 : index
    %133 = memref.load %arg1[%c27] : memref<37xf32, #tpu.memory_space<smem>>
    %134 = vector.broadcast %133 : f32 to vector<1x128xf32>
    %135 = arith.mulf %10, %134 : vector<1x128xf32>
    %c28 = arith.constant 28 : index
    %136 = memref.load %arg1[%c28] : memref<37xf32, #tpu.memory_space<smem>>
    %137 = vector.broadcast %136 : f32 to vector<1x128xf32>
    %138 = arith.mulf %11, %137 : vector<1x128xf32>
    %139 = arith.addf %135, %138 : vector<1x128xf32>
    %c29 = arith.constant 29 : index
    %140 = memref.load %arg1[%c29] : memref<37xf32, #tpu.memory_space<smem>>
    %141 = vector.broadcast %140 : f32 to vector<1x128xf32>
    %142 = arith.mulf %12, %141 : vector<1x128xf32>
    %143 = arith.addf %139, %142 : vector<1x128xf32>
    %c30 = arith.constant 30 : index
    %144 = memref.load %arg1[%c30] : memref<37xf32, #tpu.memory_space<smem>>
    %145 = vector.broadcast %144 : f32 to vector<1x128xf32>
    %146 = arith.mulf %13, %145 : vector<1x128xf32>
    %147 = arith.addf %143, %146 : vector<1x128xf32>
    %c31 = arith.constant 31 : index
    %148 = memref.load %arg1[%c31] : memref<37xf32, #tpu.memory_space<smem>>
    %149 = vector.broadcast %148 : f32 to vector<1x128xf32>
    %150 = arith.addf %147, %149 : vector<1x128xf32>
    %cst_6 = arith.constant 0.000000e+00 : f32
    %151 = vector.broadcast %cst_6 : f32 to vector<1x128xf32>
    %152 = arith.cmpf ogt, %150, %151 : vector<1x128xf32>
    %cst_7 = arith.constant 0.00999999977 : f32
    %153 = vector.broadcast %cst_7 : f32 to vector<1x128xf32>
    %154 = arith.mulf %153, %150 : vector<1x128xf32>
    %155 = arith.select %152, %150, %154 : vector<1x128xi1>, vector<1x128xf32>
    %c35 = arith.constant 35 : index
    %156 = memref.load %arg1[%c35] : memref<37xf32, #tpu.memory_space<smem>>
    %157 = vector.broadcast %156 : f32 to vector<1x128xf32>
    %158 = arith.mulf %155, %157 : vector<1x128xf32>
    %159 = arith.addf %132, %158 : vector<1x128xf32>
    %c36 = arith.constant 36 : index
    %160 = memref.load %arg1[%c36] : memref<37xf32, #tpu.memory_space<smem>>
    %161 = vector.broadcast %160 : f32 to vector<1x128xf32>
    %162 = arith.addf %159, %161 : vector<1x128xf32>
    %c0_8 = arith.constant 0 : index
    %c0_9 = arith.constant 0 : index
    %163 = vector.load %arg4[%c0_8, %c0_9] : memref<1x128xf32, #tpu.memory_space<vmem>>, vector<1x128xf32>
    tpu.vector_store %arg4[%c0_8, %c0_9], %162 {strides = array<i32>} : memref<1x128xf32, #tpu.memory_space<vmem>>, vector<1x128xf32>,
    return
  }
  func.func @transform_0(%arg0: i32) -> i32 {
    %c0_i32 = arith.constant 0 : i32
    %c0_i32_0 = arith.constant 0 : i32
    return %c0_i32 : i32
  }
  func.func @transform_1(%arg0: i32) -> (i32, i32) {
    %c0_i32 = arith.constant 0 : i32
    %c0_i32_0 = arith.constant 0 : i32
    return %c0_i32, %arg0 : i32, i32
  }
  func.func @transform_2(%arg0: i32) -> (i32, i32) {
    %c0_i32 = arith.constant 0 : i32
    %c0_i32_0 = arith.constant 0 : i32
    return %c0_i32, %arg0 : i32, i32
  }
  func.func @transform_3(%arg0: i32) -> (i32, i32) {
    %c0_i32 = arith.constant 0 : i32
    %c0_i32_0 = arith.constant 0 : i32
    return %c0_i32, %arg0 : i32, i32
  }
}

</mosaic_0001>

<bundles_post_ra>
// kernel: tpu_custom_call.1
= control target key start
LH: loop header
LB: loop body
LE: loop exit
PB: predicated region body
PF: predicated region fallthrough
CT: control target
= control target key end

     0   :  { %8 = vsyncpa [#allocation5], 0  ;;  %s544_s0 = inlined_call_operand.hbm [shape: f32[37], index: 0, kind: input, shape index: {}]   ;;  %s545_s1 = inlined_call_operand.hbm [shape: f32[8,128], index: 1, kind: input, shape index: {}]   ;;  %s546_s2 = inlined_call_operand.vmem [shape: f32[4,128], index: 2, kind: input, shape index: {}]   ;;  %s547_s3 = inlined_call_operand.hbm [shape: f32[1,128], index: 3, kind: output, shape index: {}]  }
   0x1   :  { %9 = vsyncpa [#allocation3], 0 }
   0x2   :  { %10 = vsyncpa [#allocation4], 0  ;;  %s312_s14 = scalar_lea.hbm %s544_s0, 16 }
   0x3   :  { %p313_p0 = scmp.ne.s32.totalorder %s544_s0, %s312_s14  ;;  %p316_p1 = scmp.lt.u32.totalorder %s312_s14, %s544_s0 }
   0x5   :  { %p318_p2 = pnand %p316_p1, %p313_p0 }
   0x7   :  { %321 = shalt.err (!%p318_p2)
}
   0x8   :  { %s372_s19 = smov [#allocation2]   ;;  %s373_s22 = smov [#allocation6]  }
   0x9   :  { %18 = dma.hbm_to_smem %s544_s0, 16, %s372_s19, [#allocation5]  }
   0xa   :  { %s25_s23 = sshll.u32 %s373_s22, 4  ;;  %s322_s26 = scalar_lea.hbm %s545_s1, 128  ;;  %s26_s23 = int_to_ptr.vmem [resolvable:$true] %s25_s23 }
   0xb   :  { %p323_p3 = scmp.ne.s32.totalorder %s545_s1, %s322_s26  ;;  %p326_p4 = scmp.lt.u32.totalorder %s322_s26, %s545_s1 }
   0xd   :  { %p328_p5 = pnand %p326_p4, %p323_p3 }
   0xf   :  { %331 = shalt.err (!%p328_p5)
}
  0x10   :  { %s332_s4 = scalar_lea.vmem %s26_s23, 128  ;;  %p337_p7 = scmp.lt.s32.totalorder %s26_s23, %s26_s23 }
  0x11   :  { %p333_p6 = scmp.ne.s32.totalorder %s26_s23, %s332_s4  ;;  %p338_p8 = scmp.lt.s32.totalorder %s332_s4, %s332_s4 }
  0x13   :  { %p339_p9 = por %p338_p8, %p337_p7 }
  0x15   :  { %p340_p10 = pnand %p339_p9, %p333_p6 }
  0x17   :  { %343 = shalt.err (!%p340_p10)
}
  0x18   :  { %28 = dma.hbm_to_vmem [thread:$0]  %s545_s1, 128, %s26_s23, [#allocation3]  }
  0x19   :  { %366 = dma.done.wait [#allocation5], 16  }
  0x1a   :  { %367 = vsyncadd [#allocation5], 4294967280 }
  0x1b   :  { %368 = dma.done.wait [#allocation3], 128  }
  0x1c   :  { %369 = vsyncadd [#allocation3], 4294967168 }
  0x1d   :  { %37 = sfence }
  0x1e   :  { %s40_s6 = sld [smem:[#allocation2]]  ;;  %s273_s7 = sld [smem:[#allocation2 + $0x3]]  ;;  %v423_v0 = vld [vmem:[#allocation6] sm:$0xff] }
  0x1f   :  { %s274_s8 = sld [smem:[#allocation2 + $0x6]]  ;;  %s275_s9 = sld [smem:[#allocation2 + $0x9]] }
  0x20   :  { %s276_s10 = sld [smem:[#allocation2 + $0xc]]  ;;  %s277_s11 = sld [smem:[#allocation2 + $0xf]] }
  0x21   :  { %s419_s12 = sld [smem:[#allocation2 + $0x12]]  ;;  %s421_s13 = sld [smem:[#allocation2 + $0x15]] }
  0x22   :  { %s425_s14 = sld [smem:[#allocation2 + $0x1]]  ;;  %s427_s1 = sld [smem:[#allocation2 + $0x4]] }
  0x23   :  { %s429_s15 = sld [smem:[#allocation2 + $0x7]]  ;;  %s432_s16 = sld [smem:[#allocation2 + $0xa]] }
  0x24   :  { %v41_v1 = vstv %s40_s6  ;;  %v44_v3 = vstv %s273_s7  ;;  %s434_s17 = sld [smem:[#allocation2 + $0xd]]  ;;  %s438_s18 = sld [smem:[#allocation2 + $0x10]] }
  0x25   :  { %v42_v2 = vmul.f32 %v41_v1, %v423_v0  ;;  %v51_v4 = vstv %s274_s8  ;;  %v45_v5 = vmul.f32 %v44_v3, %v423_v0  ;;  %v58_v7 = vstv %s275_s9  ;;  %s443_s19 = sld [smem:[#allocation2 + $0x13]]  ;;  %s445_s20 = sld [smem:[#allocation2 + $0x16]] }
  0x26   :  { %v52_v6 = vmul.f32 %v51_v4, %v423_v0  ;;  %v65_v8 = vstv %s276_s10  ;;  %v59_v9 = vmul.f32 %v58_v7, %v423_v0  ;;  %v72_v11 = vstv %s277_s11  ;;  %s449_s21 = sld [smem:[#allocation2 + $0x18]]  ;;  %s452_s22 = sld [smem:[#allocation2 + $0x2]] }
  0x27   :  { %v66_v10 = vmul.f32 %v65_v8, %v423_v0  ;;  %v79_v12 = vstv %s419_s12  ;;  %v47_v13 = vrot.slane %v45_v5, 1  ;;  %v73_v15 = vmul.f32 %v72_v11, %v423_v0  ;;  %s457_s23 = sld [smem:[#allocation2 + $0x5]]  ;;  %s462_s24 = sld [smem:[#allocation2 + $0x8]] }
  0x28   :  { %v54_v14 = vrot.slane %v52_v6, 2  ;;  %v86_v16 = vstv %s421_s13  ;;  %v61_v18 = vrot.slane %v59_v9, 3  ;;  %v80_v20 = vmul.f32 %v79_v12, %v423_v0  ;;  %s464_s25 = sld [smem:[#allocation2 + $0xb]]  ;;  %s470_s26 = sld [smem:[#allocation2 + $0xe]] }
  0x29   :  { %v49_v17 = vadd.f32 %v47_v13, %v42_v2  ;;  %v68_v19 = vrot.slane %v66_v10, 4  ;;  %v75_v21 = vrot.slane %v73_v15, 5  ;;  %v100_v22 = vstv %s425_s14  ;;  %s472_s27 = sld [smem:[#allocation2 + $0x11]]  ;;  %s479_s28 = sld [smem:[#allocation2 + $0x14]] }
  0x2a   :  { %v103_v23 = vstv %s427_s1  ;;  %v110_v24 = vstv %s429_s15  ;;  %v87_v26 = vmul.f32 %v86_v16, %v423_v0  ;;  %v101_v27 = vmul.f32 %v100_v22, %v423_v0  ;;  %s483_s29 = sld [smem:[#allocation2 + $0x17]]  ;;  %s487_s30 = sld [smem:[#allocation2 + $0x19]] }
  0x2b   :  { %v56_v25 = vadd.f32 %v54_v14, %v49_v17  ;;  %v104_v28 = vmul.f32 %v103_v23, %v423_v0  ;;  %v111_v29 = vmul.f32 %v110_v24, %v423_v0  ;;  %v117_v30 = vstv %s432_s16  ;;  %s491_s4 = sld [smem:[#allocation2 + $0x1b]]  ;;  %s495_s0 = sld [smem:[#allocation2 + $0x1c]] }
  0x2c   :  { %v124_v31 = vstv %s434_s17  ;;  %v131_v32 = vstv %s438_s18  ;;  %v118_v35 = vmul.f32 %v117_v30, %v423_v0  ;;  %v138_v39 = vstv %s443_s19  ;;  %s501_s5 = sld [smem:[#allocation2 + $0x1d]]  ;;  %s503_s6 = sld [smem:[#allocation2 + $0x1e]] }
  0x2d   :  { %v63_v33 = vadd.f32 %v61_v18, %v56_v25  ;;  %v106_v34 = vrot.slane %v104_v28, 1  ;;  %v125_v36 = vmul.f32 %v124_v31, %v423_v0  ;;  %v113_v37 = vrot.slane %v111_v29, 2  ;;  %s509_s7 = sld [smem:[#allocation2 + $0x20]]  ;;  %s511_s8 = sld [smem:[#allocation2 + $0x21]] }
  0x2e   :  { %v132_v38 = vmul.f32 %v131_v32, %v423_v0  ;;  %v145_v40 = vstv %s445_s20  ;;  %v82_v42 = vrot.slane %v80_v20, 6  ;;  %v120_v44 = vrot.slane %v118_v35, 3  ;;  %s520_s11 = sld [smem:[#allocation2 + $0x1a]]  ;;  %s526_s12 = sld [smem:[#allocation2 + $0x1f]] }
  0x2f   :  { %v70_v41 = vadd.f32 %v68_v19, %v63_v33  ;;  %v108_v43 = vadd.f32 %v106_v34, %v101_v27  ;;  %v89_v45 = vrot.slane %v87_v26, 7  ;;  %v93_v46 = vstv %s449_s21  ;;  %v39_v19 = vld [vmem:[%s546_s2] sm:$0xf]  ;;  %s301_s2 = sld [smem:[#allocation2 + $0x22]]  ;;  %s307_s13 = sld [smem:[#allocation2 + $0x23]] }
  0x30   :  { %v127_v47 = vrot.slane %v125_v36, 4  ;;  %v139_v48 = vmul.f32 %v138_v39, %v423_v0  ;;  %v146_v51 = vmul.f32 %v145_v40, %v423_v0  ;;  %v160_v52 = vstv %s452_s22  ;;  %s308_s14 = sld [smem:[#allocation2 + $0x24]]  ;;  %s374_s1 = smov [#allocation7]  }
  0x31   :  { %v77_v49 = vadd.f32 %v75_v21, %v70_v41  ;;  %v115_v50 = vadd.f32 %v113_v37, %v108_v43  ;;  %v134_v53 = vrot.slane %v132_v38, 5  ;;  %v161_v55 = vmul.f32 %v160_v52, %v423_v0  ;;  %s263_s15 = sshll.u32 %s374_s1, 4  ;;  %s264_s15 = int_to_ptr.vmem [resolvable:$true] %s263_s15 }
  0x32   :  { %v141_v54 = vrot.slane %v139_v48, 6  ;;  %v163_v56 = vstv %s457_s23  ;;  %v170_v60 = vstv %s462_s24  ;;  %v177_v62 = vstv %s464_s25  ;;  %s344_s16 = scalar_lea.vmem %s264_s15, 16  ;;  %s348_s17 = scalar_lea.vmem %s264_s15, 32 }
  0x33   :  { %v84_v57 = vadd.f32 %v82_v42, %v77_v49  ;;  %v122_v58 = vadd.f32 %v120_v44, %v115_v50  ;;  %v164_v59 = vmul.f32 %v163_v56, %v423_v0  ;;  %v171_v61 = vmul.f32 %v170_v60, %v423_v0  ;;  %p345_p11 = scmp.ne.s32.totalorder %s264_s15, %s344_s16  ;;  %p349_p12 = scmp.lt.s32.totalorder %s264_s15, %s264_s15 }
  0x34   :  { %v184_v63 = vstv %s470_s26  ;;  %v191_v1 = vstv %s472_s27  ;;  %v148_v3 = vrot.slane %v146_v51, 7  ;;  %v178_v5 = vmul.f32 %v177_v62, %v423_v0  ;;  %p350_p13 = scmp.lt.s32.totalorder %s348_s17, %s344_s16 }
  0x35   :  { %v129_v2 = vadd.f32 %v127_v47, %v122_v58  ;;  %v166_v4 = vrot.slane %v164_v59, 1  ;;  %v91_v6 = vadd.f32 %v89_v45, %v84_v57  ;;  %v173_v7 = vrot.slane %v171_v61, 2 }
  0x36   :  { %v185_v8 = vmul.f32 %v184_v63, %v423_v0  ;;  %v198_v9 = vstv %s479_s28  ;;  %v180_v12 = vrot.slane %v178_v5, 3  ;;  %v192_v13 = vmul.f32 %v191_v1, %v423_v0  ;;  %p351_p0 = por %p350_p13, %p349_p12 }
  0x37   :  { %v136_v10 = vadd.f32 %v134_v53, %v129_v2  ;;  %v168_v11 = vadd.f32 %v166_v4, %v161_v55  ;;  %v199_v14 = vmul.f32 %v198_v9, %v423_v0  ;;  %v205_v15 = vstv %s483_s29 }
  0x38   :  { %v187_v18 = vrot.slane %v185_v8, 4  ;;  %v94_v20 = vadd.f32 %v93_v46, %v91_v6  ;;  %v152_v21 = vstv %s487_s30  ;;  %v206_v22 = vmul.f32 %v205_v15, %v423_v0  ;;  %p352_p1 = pnand %p351_p0, %p345_p11 }
  0x39   :  { %v143_v16 = vadd.f32 %v141_v54, %v136_v10  ;;  %v175_v17 = vadd.f32 %v173_v7, %v168_v11  ;;  %v220_v23 = vstv %s491_s4  ;;  %v194_v26 = vrot.slane %v192_v13, 5 }
  0x3a   :  { %v201_v27 = vrot.slane %v199_v14, 6  ;;  %v221_v28 = vmul.f32 %v220_v23, %v39_v19  ;;  %v223_v29 = vstv %s495_s0  ;;  %v230_v30 = vstv %s501_s5 }
  0x3b   :  { %v150_v24 = vadd.f32 %v148_v3, %v143_v16  ;;  %v182_v25 = vadd.f32 %v180_v12, %v175_v17  ;;  %v237_v31 = vstv %s503_s6  ;;  %v224_v34 = vmul.f32 %v223_v29, %v39_v19 }
  0x3c   :  { %v231_v0 = vmul.f32 %v230_v30, %v39_v19  ;;  %v95_v35 = vmax.f32 %v94_v20, 0.0  ;;  %v208_v36 = vrot.slane %v206_v22, 7  ;;  %v238_v37 = vmul.f32 %v237_v31, %v39_v19 }
  0x3d   :  { %v153_v32 = vadd.f32 %v152_v21, %v150_v24  ;;  %v189_v33 = vadd.f32 %v187_v18, %v182_v25  ;;  %v226_v40 = vrot.slane %v224_v34, 1  ;;  %v97_v42 = vstv %s509_s7 }
  0x3e   :  { %v233_v41 = vrot.slane %v231_v0, 2  ;;  %v156_v43 = vstv %s511_s8  ;;  %v240_v46 = vrot.slane %v238_v37, 3  ;;  %v212_v47 = vstv %s520_s11 }
  0x3f   :  { %v154_v38 = vmax.f32 %v153_v32, 0.0  ;;  %v196_v39 = vadd.f32 %v194_v26, %v189_v33  ;;  %v228_v45 = vadd.f32 %v226_v40, %v221_v28  ;;  %v98_v48 = vmul.f32 %v97_v42, %v95_v35 }
  0x40   :  { %v244_v52 = vstv %s526_s12  ;;  %v216_v55 = vstv %s301_s2  ;;  %v250_v61 = vstv %s307_s13  ;;  %v254_v2 = vstv %s308_s14 }
  0x41   :  { %v203_v44 = vadd.f32 %v201_v27, %v196_v39  ;;  %v157_v49 = vmul.f32 %v156_v43, %v154_v38  ;;  %v235_v51 = vadd.f32 %v233_v41, %v228_v45 }
  0x43   :  { %v210_v50 = vadd.f32 %v208_v36, %v203_v44  ;;  %v242_v54 = vadd.f32 %v240_v46, %v235_v51  ;;  %v158_v56 = vadd.f32 %v157_v49, %v98_v48 }
  0x45   :  { %v213_v53 = vadd.f32 %v212_v47, %v210_v50  ;;  %v245_v58 = vadd.f32 %v244_v52, %v242_v54 }
  0x47   :  { %v214_v57 = vmax.f32 %v213_v53, 0.0  ;;  %vm246_vm0 = vcmp.gt.f32.partialorder %v245_v58, 0.0  ;;  %v247_v60 = vmul.f32 0.01, %v245_v58 }
  0x49   :  { %v217_v59 = vmul.f32 %v216_v55, %v214_v57  ;;  %v248_v63 = vsel %vm246_vm0, %v245_v58, %v247_v60 }
  0x4a   :  { %v251_v1 = vmul.f32 %v250_v61, %v248_v63 }
  0x4b   :  { %v218_v62 = vadd.f32 %v217_v59, %v158_v56 }
  0x4d   :  { %v252_v3 = vadd.f32 %v251_v1, %v218_v62 }
  0x4f   :  { %v255_v4 = vadd.f32 %v254_v2, %v252_v3 }
  0x51   :  { %256 = vst [vmem:[#allocation7] sm:$0x1] %v255_v4 }
  0x52   :  { %355 = shalt.err (!%p352_p1)
}
  0x53   :  { %s356_s20 = scalar_lea.hbm %s547_s3, 16 }
  0x54   :  { %p357_p2 = scmp.ne.s32.totalorder %s547_s3, %s356_s20  ;;  %p360_p3 = scmp.lt.u32.totalorder %s356_s20, %s547_s3 }
  0x56   :  { %p362_p4 = pnand %p360_p3, %p357_p2 }
  0x58   :  { %365 = shalt.err (!%p362_p4)
}
  0x59   :  { %266 = dma.vmem_to_hbm [thread:$0]  %s264_s15, 16, %s547_s3, [#allocation4]  }
  0x5a   :  { %370 = dma.done.wait [#allocation4], 16  }
  0x5b   :  { %371 = vsyncadd [#allocation4], 4294967280 }
  0x5c   :  { %270 = vsyncpa [#allocation3], 1 }
  0x5d   :  { %271 = vsyncpa [#allocation4], 1 }
  0x5e   :  { %272 = vsyncpa [#allocation5], 1 }

</bundles_post_ra>
